<compile_context>
chip_gen: v5e
topology: v5e:2x2
jax: 0.10.0
libtpu: 0.0.40
codegen_flags: <defaults>
</compile_context>

<pallas_src>
import jax
import jax.numpy as jnp
from jax.experimental import pallas as pl
from jax.experimental.pallas import tpu as pltpu

D_IN = 784            # fc1 input features (28*28)
H1 = 256
H2 = 128
N_OUT = 10            # logical logits
N3_PAD = 128          # lane-dense padded logits


def mlp_kernel(x_ref, w1_ref, b1_ref, w2_ref, b2_ref, w3_ref, b3_ref, o_ref):
    # x tile arrives as raw f32; cast to bf16 on-chip right before the MXU.
    x = x_ref[...].astype(jnp.bfloat16)

    h1 = jnp.dot(x, w1_ref[...], preferred_element_type=jnp.float32)
    h1 = jnp.maximum(h1 + b1_ref[...], 0.0)                      # (TILE_M, 256) f32

    h2 = jnp.dot(h1.astype(jnp.bfloat16), w2_ref[...],
                 preferred_element_type=jnp.float32)
    h2 = jnp.maximum(h2 + b2_ref[...], 0.0)                      # (TILE_M, 128) f32

    h3 = jnp.dot(h2.astype(jnp.bfloat16), w3_ref[...],
                 preferred_element_type=jnp.float32)
    o_ref[...] = (h3 + b3_ref[...]).astype(o_ref.dtype)          # (TILE_M, 128) bf16


def _round_up(x, m):
    return -(-x // m) * m


def _pick_tile_m(batch):
    """Large streaming batch tiles to amortize per-grid-step overhead.

    Small batches: a single block covering everything (rounded to the 8-row
    sublane granule).  Large batches: tiles up to 512 rows, always leaving
    >= 2 grid steps so v7x's two TensorCores both get work.
    """
    if batch <= 512:
        return _round_up(max(batch, 8), 8)
    return min(512, _round_up(-(-batch // 2), 8))


def init_params(key):
    """Logical f32 parameters with Net.__init__ shapes (weights as (in, out))."""
    dims = [(D_IN, H1), (H1, H2), (H2, N_OUT)]
    params = []
    for i, (din, dout) in enumerate(dims):
        kw, kb = jax.random.split(jax.random.fold_in(key, i))
        bound = 1.0 / (din ** 0.5)  # torch.nn.Linear default init scale
        w = jax.random.uniform(kw, (din, dout), jnp.float32, -bound, bound)
        b = jax.random.uniform(kb, (1, dout), jnp.float32, -bound, bound)
        params += [w, b]
    return tuple(params)


def prepare_params(params):
    """One-time (off the hot path) cast/pad into the kernel layout."""
    w1, b1, w2, b2, w3, b3 = params
    w1p = w1.astype(jnp.bfloat16)                                   # (784, 256)
    w2p = w2.astype(jnp.bfloat16)                                   # (256, 128)
    w3p = jnp.zeros((H2, N3_PAD), jnp.bfloat16).at[:, :N_OUT].set(  # (128, 128)
        w3.astype(jnp.bfloat16))
    b1p = b1.astype(jnp.float32)
    b2p = b2.astype(jnp.float32)
    b3p = jnp.zeros((1, N3_PAD), jnp.float32).at[:, :N_OUT].set(
        b3.astype(jnp.float32))
    return (w1p, b1p, w2p, b2p, w3p, b3p)


def net_forward(x_nchw, prepared_params, tile_m=None):
    """Forward pass matching PyTorch Net.forward semantics (returns (B, 10) f32)."""
    w1, b1, w2, b2, w3, b3 = prepared_params
    batch = x_nchw.shape[0]
    if tile_m is None:
        tile_m = _pick_tile_m(batch)

    # x.view(-1, 784): a free reshape of the contiguous NCHW input.  No cast,
    # no padding -- the kernel reads raw f32 rows and casts on-chip.
    x = x_nchw.reshape(batch, D_IN)

    grid = (pl.cdiv(batch, tile_m),)

    flops = 2 * batch * (D_IN * H1 + H1 * H2 + H2 * N3_PAD)
    bytes_accessed = (
        x.size * 4                                  # f32 input stream
        + (w1.size + w2.size + w3.size) * 2         # bf16 weights (fetched once)
        + (b1.size + b2.size + b3.size) * 4         # f32 biases (fetched once)
        + batch * N3_PAD * 2                        # bf16 output slab
    )

    out = pl.pallas_call(
        mlp_kernel,
        out_shape=jax.ShapeDtypeStruct((batch, N3_PAD), jnp.bfloat16),
        grid_spec=pltpu.PrefetchScalarGridSpec(
            num_scalar_prefetch=0,
            grid=grid,
            in_specs=[
                pl.BlockSpec((tile_m, D_IN), lambda i: (i, 0)),   # x tile (f32)
                pl.BlockSpec((D_IN, H1), lambda i: (0, 0)),       # w1 resident
                pl.BlockSpec((1, H1), lambda i: (0, 0)),          # b1 resident
                pl.BlockSpec((H1, H2), lambda i: (0, 0)),         # w2 resident
                pl.BlockSpec((1, H2), lambda i: (0, 0)),          # b2 resident
                pl.BlockSpec((H2, N3_PAD), lambda i: (0, 0)),     # w3 resident
                pl.BlockSpec((1, N3_PAD), lambda i: (0, 0)),      # b3 resident
            ],
            out_specs=pl.BlockSpec((tile_m, N3_PAD), lambda i: (i, 0)),
        ),
        compiler_params=pltpu.CompilerParams(
            dimension_semantics=("parallel",)),
        cost_estimate=pl.CostEstimate(
            flops=flops, transcendentals=0, bytes_accessed=bytes_accessed),
    )(x, w1, b1, w2, b2, w3, b3)

    # Tiny (batch, 10) slice of the lane-padded bf16 slab; cast back to f32 to
    # match the torch module's output dtype.
    return out[:, :N_OUT].astype(jnp.float32)


if __name__ == "__main__":
    key = jax.random.PRNGKey(0)
    params = init_params(key)
    prepared = prepare_params(params)          # cast/pad once, off the hot path

    # MNIST-shaped input (NCHW), small batch.
    x = jax.random.normal(jax.random.fold_in(key, 100), (2, 1, 28, 28),
                          jnp.float32)

    fwd = jax.jit(net_forward)
    logits = fwd(x, prepared)
    jax.block_until_ready(logits)

    # Sanity checks: shape/dtype and agreement with a plain-JAX f32 reference
    # (tolerance loosened for the bf16 weight/activation/output path).
    assert logits.shape == (2, 10) and logits.dtype == jnp.float32
    w1, b1, w2, b2, w3, b3 = params
    xf = x.reshape(2, -1)
    ref = jnp.maximum(xf @ w1 + b1, 0.0)
    ref = jnp.maximum(ref @ w2 + b2, 0.0)
    ref = ref @ w3 + b3
    assert jnp.allclose(logits, ref, atol=3e-2, rtol=3e-2)

    print("KERNEL_OK")
</pallas_src>

<mosaic_0001>
module attributes {stable_mosaic.version = 11 : i64} {
  func.func @mlp_kernel(%arg0: i32, %arg1: memref<8x784xf32, #tpu.memory_space<vmem>>, %arg2: memref<784x256xbf16, #tpu.memory_space<vmem>>, %arg3: memref<1x256xf32, #tpu.memory_space<vmem>>, %arg4: memref<256x128xbf16, #tpu.memory_space<vmem>>, %arg5: memref<1x128xf32, #tpu.memory_space<vmem>>, %arg6: memref<128x128xbf16, #tpu.memory_space<vmem>>, %arg7: memref<1x128xf32, #tpu.memory_space<vmem>>, %arg8: memref<8x128xbf16, #tpu.memory_space<vmem>>) attributes {dimension_semantics = [#tpu.dimension_semantics<parallel>], iteration_bounds = array<i64: 1>, scalar_prefetch = 0 : i64, scratch_operands = 0 : i64, tpu.core_type = #tpu.core_type<tc>, window_params = [{transform_indices = @transform_0, window_bounds = array<i64: 8, 784>}, {pipeline_mode = #tpu.pipeline_mode<synchronous>, transform_indices = @transform_1, window_bounds = array<i64: 784, 256>}, {pipeline_mode = #tpu.pipeline_mode<synchronous>, transform_indices = @transform_2, window_bounds = array<i64: 1, 256>}, {pipeline_mode = #tpu.pipeline_mode<synchronous>, transform_indices = @transform_3, window_bounds = array<i64: 256, 128>}, {pipeline_mode = #tpu.pipeline_mode<synchronous>, transform_indices = @transform_4, window_bounds = array<i64: 1, 128>}, {pipeline_mode = #tpu.pipeline_mode<synchronous>, transform_indices = @transform_5, window_bounds = array<i64: 128, 128>}, {pipeline_mode = #tpu.pipeline_mode<synchronous>, transform_indices = @transform_6, window_bounds = array<i64: 1, 128>}, {transform_indices = @transform_7, window_bounds = array<i64: 8, 128>}]} {
    %c0 = arith.constant 0 : index
    %c0_0 = arith.constant 0 : index
    %0 = vector.load %arg1[%c0, %c0_0] : memref<8x784xf32, #tpu.memory_space<vmem>>, vector<8x784xf32>
    %1 = arith.truncf %0 : vector<8x784xf32> to vector<8x784xbf16>
    %c0_1 = arith.constant 0 : index
    %c0_2 = arith.constant 0 : index
    %2 = vector.load %arg2[%c0_1, %c0_2] : memref<784x256xbf16, #tpu.memory_space<vmem>>, vector<784x256xbf16>
    %cst = arith.constant dense<0.000000e+00> : vector<8x256xf32>
    %3 = tpu.matmul %1, %2, %cst {dimension_numbers = #tpu.dot_dimension_numbers<[1], [0], [0], [1], [0, 0, 1, 1], [], []>} : vector<8x784xbf16>, vector<784x256xbf16>, vector<8x256xf32> -> vector<8x256xf32>
    %c0_3 = arith.constant 0 : index
    %c0_4 = arith.constant 0 : index
    %4 = vector.load %arg3[%c0_3, %c0_4] : memref<1x256xf32, #tpu.memory_space<vmem>>, vector<1x256xf32>
    %5 = vector.broadcast %4 : vector<1x256xf32> to vector<8x256xf32>
    %6 = arith.addf %3, %5 : vector<8x256xf32>
    %cst_5 = arith.constant 0.000000e+00 : f32
    %7 = vector.broadcast %cst_5 : f32 to vector<8x256xf32>
    %8 = arith.maximumf %6, %7 : vector<8x256xf32>
    %9 = arith.truncf %8 : vector<8x256xf32> to vector<8x256xbf16>
    %c0_6 = arith.constant 0 : index
    %c0_7 = arith.constant 0 : index
    %10 = vector.load %arg4[%c0_6, %c0_7] : memref<256x128xbf16, #tpu.memory_space<vmem>>, vector<256x128xbf16>
    %cst_8 = arith.constant dense<0.000000e+00> : vector<8x128xf32>
    %11 = tpu.matmul %9, %10, %cst_8 {dimension_numbers = #tpu.dot_dimension_numbers<[1], [0], [0], [1], [0, 0, 1, 1], [], []>} : vector<8x256xbf16>, vector<256x128xbf16>, vector<8x128xf32> -> vector<8x128xf32>
    %c0_9 = arith.constant 0 : index
    %c0_10 = arith.constant 0 : index
    %12 = vector.load %arg5[%c0_9, %c0_10] : memref<1x128xf32, #tpu.memory_space<vmem>>, vector<1x128xf32>
    %13 = vector.broadcast %12 : vector<1x128xf32> to vector<8x128xf32>
    %14 = arith.addf %11, %13 : vector<8x128xf32>
    %cst_11 = arith.constant 0.000000e+00 : f32
    %15 = vector.broadcast %cst_11 : f32 to vector<8x128xf32>
    %16 = arith.maximumf %14, %15 : vector<8x128xf32>
    %17 = arith.truncf %16 : vector<8x128xf32> to vector<8x128xbf16>
    %c0_12 = arith.constant 0 : index
    %c0_13 = arith.constant 0 : index
    %18 = vector.load %arg6[%c0_12, %c0_13] : memref<128x128xbf16, #tpu.memory_space<vmem>>, vector<128x128xbf16>
    %cst_14 = arith.constant dense<0.000000e+00> : vector<8x128xf32>
    %19 = tpu.matmul %17, %18, %cst_14 {dimension_numbers = #tpu.dot_dimension_numbers<[1], [0], [0], [1], [0, 0, 1, 1], [], []>} : vector<8x128xbf16>, vector<128x128xbf16>, vector<8x128xf32> -> vector<8x128xf32>
    %c0_15 = arith.constant 0 : index
    %c0_16 = arith.constant 0 : index
    %20 = vector.load %arg7[%c0_15, %c0_16] : memref<1x128xf32, #tpu.memory_space<vmem>>, vector<1x128xf32>
    %21 = vector.broadcast %20 : vector<1x128xf32> to vector<8x128xf32>
    %22 = arith.addf %19, %21 : vector<8x128xf32>
    %23 = arith.truncf %22 : vector<8x128xf32> to vector<8x128xbf16>
    %c0_17 = arith.constant 0 : index
    %c0_18 = arith.constant 0 : index
    %24 = vector.load %arg8[%c0_17, %c0_18] : memref<8x128xbf16, #tpu.memory_space<vmem>>, vector<8x128xbf16>
    tpu.vector_store %arg8[%c0_17, %c0_18], %23 {strides = array<i32>} : memref<8x128xbf16, #tpu.memory_space<vmem>>, vector<8x128xbf16>,
    return
  }
  func.func @transform_0(%arg0: i32) -> (i32, i32) {
    %c0_i32 = arith.constant 0 : i32
    %c0_i32_0 = arith.constant 0 : i32
    return %arg0, %c0_i32 : i32, i32
  }
  func.func @transform_1(%arg0: i32) -> (i32, i32) {
    %c0_i32 = arith.constant 0 : i32
    %c0_i32_0 = arith.constant 0 : i32
    %c0_i32_1 = arith.constant 0 : i32
    return %c0_i32, %c0_i32_0 : i32, i32
  }
  func.func @transform_2(%arg0: i32) -> (i32, i32) {
    %c0_i32 = arith.constant 0 : i32
    %c0_i32_0 = arith.constant 0 : i32
    %c0_i32_1 = arith.constant 0 : i32
    return %c0_i32, %c0_i32_0 : i32, i32
  }
  func.func @transform_3(%arg0: i32) -> (i32, i32) {
    %c0_i32 = arith.constant 0 : i32
    %c0_i32_0 = arith.constant 0 : i32
    %c0_i32_1 = arith.constant 0 : i32
    return %c0_i32, %c0_i32_0 : i32, i32
  }
  func.func @transform_4(%arg0: i32) -> (i32, i32) {
    %c0_i32 = arith.constant 0 : i32
    %c0_i32_0 = arith.constant 0 : i32
    %c0_i32_1 = arith.constant 0 : i32
    return %c0_i32, %c0_i32_0 : i32, i32
  }
  func.func @transform_5(%arg0: i32) -> (i32, i32) {
    %c0_i32 = arith.constant 0 : i32
    %c0_i32_0 = arith.constant 0 : i32
    %c0_i32_1 = arith.constant 0 : i32
    return %c0_i32, %c0_i32_0 : i32, i32
  }
  func.func @transform_6(%arg0: i32) -> (i32, i32) {
    %c0_i32 = arith.constant 0 : i32
    %c0_i32_0 = arith.constant 0 : i32
    %c0_i32_1 = arith.constant 0 : i32
    return %c0_i32, %c0_i32_0 : i32, i32
  }
  func.func @transform_7(%arg0: i32) -> (i32, i32) {
    %c0_i32 = arith.constant 0 : i32
    %c0_i32_0 = arith.constant 0 : i32
    return %arg0, %c0_i32 : i32, i32
  }
}

</mosaic_0001>

<bundles_post_ra>
// kernel: net_forward.1
= control target key start
LH: loop header
LB: loop body
LE: loop exit
PB: predicated region body
PF: predicated region fallthrough
CT: control target
= control target key end

     0   :  { %12 = vsyncpa [#allocation3], 0  ;;  %s1832_s27 = smov [#allocation2]   ;;  %s1833_s29 = smov 128   ;;  %s2016_s0 = inlined_call_operand.vmem [shape: f32[2,784], index: 0, kind: input, shape index: {}]   ;;  %s2017_s1 = inlined_call_operand.hbm [shape: bf16[784,256], index: 1, kind: input, shape index: {}]   ;;  %s2018_s2 = inlined_call_operand.vmem [shape: f32[1,256], index: 2, kind: input, shape index: {}]   ;;  %s2019_s3 = inlined_call_operand.vmem [shape: bf16[256,128], index: 3, kind: input, shape index: {}]   ;;  %s2020_s4 = inlined_call_operand.vmem [shape: f32[1,128], index: 4, kind: input, shape index: {}]   ;;  %s2021_s5 = inlined_call_operand.vmem [shape: bf16[128,128], index: 5, kind: input, shape index: {}]   ;;  %s2022_s6 = inlined_call_operand.vmem [shape: f32[1,128], index: 6, kind: input, shape index: {}]   ;;  %s2023_s7 = inlined_call_operand.vmem [shape: bf16[2,128], index: 7, kind: output, shape index: {}]  }
   0x1   :  { %s19_s26 = sshll.u32 %s2017_s1, 4  ;;  %s21_s28 = sshll.u32 %s1832_s27, 4  ;;  %s20_s26 = int_to_ptr.hbm [resolvable:$true] %s19_s26  ;;  %s22_s28 = int_to_ptr.vmem [resolvable:$true] %s21_s28 }
   0x2   :  { %s1834_s30 = smov 8  }
   0x3   :  { %27 = dma.hbm_to_vmem [thread:$0]  %s20_s26, 12544, %s22_s28, [#allocation3], %s1833_s29, %s1833_s29, %s1834_s30  }
   0x4   :  { %1830 = dma.done.wait [#allocation3], 12544  }
   0x5   :  { %1831 = vsyncadd [#allocation3], 4294954752  ;;  %v1247_v0 = vld [vmem:[#allocation2 + $0x70] sm:$0xf]  ;;  %v1694_v1 = vld [vmem:[#allocation2 + $0x74] sm:$0xf0] }
   0x6   :  { %v1375_v2 = vld [vmem:[#allocation2 + $0x170] sm:$0xf]  ;;  %v1248_v3 = vor.u32 %v1694_v1, %v1247_v0  ;;  %v1726_v4 = vld [vmem:[#allocation2 + $0x174] sm:$0xf0]  ;;  %v1239_v11 = vld [vmem:[#allocation2 + $0x60] sm:$0xf] }
   0x7   :  { %v1439_v5 = vld [vmem:[#allocation2 + $0x1f0] sm:$0xf]  ;;  %v1742_v6 = vld [vmem:[#allocation2 + $0x1f4] sm:$0xf0]  ;;  %v1376_v7 = vor.u32 %v1726_v4, %v1375_v2  ;;  %v1692_v13 = vld [vmem:[#allocation2 + $0x64] sm:$0xf0] }
   0x8   :  { %v1440_v8 = vor.u32 %v1742_v6, %v1439_v5  ;;  %v1311_v9 = vld [vmem:[#allocation2 + $0xf0] sm:$0xf]  ;;  %v1710_v10 = vld [vmem:[#allocation2 + $0xf4] sm:$0xf0]  ;;  %693 = vmatpush.bf16.msra.mxu0 %v1248_v3  ;;  %v1367_v14 = vld [vmem:[#allocation2 + $0x160] sm:$0xf]  ;;  %v1240_v16 = vor.u32 %v1692_v13, %v1239_v11 }
   0x9   :  { %v1312_v12 = vor.u32 %v1710_v10, %v1311_v9  ;;  %v1724_v15 = vld [vmem:[#allocation2 + $0x164] sm:$0xf0]  ;;  %719 = vmatpush.bf16.msra.mxu2 %v1376_v7  ;;  %v1431_v18 = vld [vmem:[#allocation2 + $0x1e0] sm:$0xf]  ;;  %v1231_v23 = vld [vmem:[#allocation2 + $0x50] sm:$0xf] }
   0xa   :  { %732 = vmatpush.bf16.msra.mxu3 %v1440_v8  ;;  %v1368_v17 = vor.u32 %v1724_v15, %v1367_v14  ;;  %v1740_v19 = vld [vmem:[#allocation2 + $0x1e4] sm:$0xf0]  ;;  %v1303_v20 = vld [vmem:[#allocation2 + $0xe0] sm:$0xf]  ;;  %v1690_v24 = vld [vmem:[#allocation2 + $0x54] sm:$0xf0] }
   0xb   :  { %706 = vmatpush.bf16.msra.mxu1 %v1312_v12  ;;  %v1432_v21 = vor.u32 %v1740_v19, %v1431_v18  ;;  %v1708_v22 = vld [vmem:[#allocation2 + $0xe4] sm:$0xf0]  ;;  %v1359_v26 = vld [vmem:[#allocation2 + $0x150] sm:$0xf]  ;;  %v1722_v27 = vld [vmem:[#allocation2 + $0x154] sm:$0xf0]  ;;  %v1232_v29 = vor.u32 %v1690_v24, %v1231_v23 }
   0xc   :  { %v1304_v25 = vor.u32 %v1708_v22, %v1303_v20  ;;  %v1423_v28 = vld [vmem:[#allocation2 + $0x1d0] sm:$0xf]  ;;  %694 = vmatpush.bf16.msra.mxu0 %v1240_v16  ;;  %v1738_v30 = vld [vmem:[#allocation2 + $0x1d4] sm:$0xf0]  ;;  %v1360_v33 = vor.u32 %v1722_v27, %v1359_v26  ;;  %v1223_v35 = vld [vmem:[#allocation2 + $0x40] sm:$0xf] }
   0xd   :  { %v1295_v31 = vld [vmem:[#allocation2 + $0xd0] sm:$0xf]  ;;  %v1706_v32 = vld [vmem:[#allocation2 + $0xd4] sm:$0xf0]  ;;  %720 = vmatpush.bf16.msra.mxu2 %v1368_v17  ;;  %v1424_v34 = vor.u32 %v1738_v30, %v1423_v28  ;;  %v1688_v36 = vld [vmem:[#allocation2 + $0x44] sm:$0xf0] }
   0xe   :  { %733 = vmatpush.bf16.msra.mxu3 %v1432_v21  ;;  %v1351_v37 = vld [vmem:[#allocation2 + $0x140] sm:$0xf]  ;;  %v1296_v38 = vor.u32 %v1706_v32, %v1295_v31  ;;  %v1720_v39 = vld [vmem:[#allocation2 + $0x144] sm:$0xf0]  ;;  %v1224_v44 = vor.u32 %v1688_v36, %v1223_v35  ;;  %v1215_v47 = vld [vmem:[#allocation2 + $0x30] sm:$0xf] }
   0xf   :  { %707 = vmatpush.bf16.msra.mxu1 %v1304_v25  ;;  %v1415_v40 = vld [vmem:[#allocation2 + $0x1c0] sm:$0xf]  ;;  %v1736_v41 = vld [vmem:[#allocation2 + $0x1c4] sm:$0xf0]  ;;  %v1352_v45 = vor.u32 %v1720_v39, %v1351_v37  ;;  %v1686_v48 = vld [vmem:[#allocation2 + $0x34] sm:$0xf0] }
  0x10   :  { %v1287_v42 = vld [vmem:[#allocation2 + $0xc0] sm:$0xf]  ;;  %v1704_v43 = vld [vmem:[#allocation2 + $0xc4] sm:$0xf0]  ;;  %695 = vmatpush.bf16.msra.mxu0 %v1232_v29  ;;  %v1416_v46 = vor.u32 %v1736_v41, %v1415_v40  ;;  %v1343_v49 = vld [vmem:[#allocation2 + $0x130] sm:$0xf]  ;;  %v1216_v56 = vor.u32 %v1686_v48, %v1215_v47 }
  0x11   :  { %721 = vmatpush.bf16.msra.mxu2 %v1360_v33  ;;  %v1288_v50 = vor.u32 %v1704_v43, %v1287_v42  ;;  %v1718_v51 = vld [vmem:[#allocation2 + $0x134] sm:$0xf0]  ;;  %v1407_v52 = vld [vmem:[#allocation2 + $0x1b0] sm:$0xf]  ;;  %v1207_v59 = vld [vmem:[#allocation2 + $0x20] sm:$0xf] }
  0x12   :  { %734 = vmatpush.bf16.msra.mxu3 %v1424_v34  ;;  %v1734_v53 = vld [vmem:[#allocation2 + $0x1b4] sm:$0xf0]  ;;  %v1279_v54 = vld [vmem:[#allocation2 + $0xb0] sm:$0xf]  ;;  %v1344_v57 = vor.u32 %v1718_v51, %v1343_v49  ;;  %v1684_v60 = vld [vmem:[#allocation2 + $0x24] sm:$0xf0] }
  0x13   :  { %708 = vmatpush.bf16.msra.mxu1 %v1296_v38  ;;  %v1702_v55 = vld [vmem:[#allocation2 + $0xb4] sm:$0xf0]  ;;  %v1408_v58 = vor.u32 %v1734_v53, %v1407_v52  ;;  %v1335_v61 = vld [vmem:[#allocation2 + $0x120] sm:$0xf]  ;;  %v1716_v63 = vld [vmem:[#allocation2 + $0x124] sm:$0xf0]  ;;  %v1208_v4 = vor.u32 %v1684_v60, %v1207_v59 }
  0x14   :  { %696 = vmatpush.bf16.msra.mxu0 %v1224_v44  ;;  %v1280_v62 = vor.u32 %v1702_v55, %v1279_v54  ;;  %v1399_v0 = vld [vmem:[#allocation2 + $0x1a0] sm:$0xf]  ;;  %v1732_v1 = vld [vmem:[#allocation2 + $0x1a4] sm:$0xf0]  ;;  %v1199_v5 = vld [vmem:[#allocation2 + $0x10] sm:$0xf]  ;;  %v1336_v7 = vor.u32 %v1716_v63, %v1335_v61 }
  0x15   :  { %722 = vmatpush.bf16.msra.mxu2 %v1352_v45  ;;  %v1271_v2 = vld [vmem:[#allocation2 + $0xa0] sm:$0xf]  ;;  %v1700_v3 = vld [vmem:[#allocation2 + $0xa4] sm:$0xf0]  ;;  %v1682_v6 = vld [vmem:[#allocation2 + $0x14] sm:$0xf0]  ;;  %v1400_v8 = vor.u32 %v1732_v1, %v1399_v0 }
  0x16   :  { %735 = vmatpush.bf16.msra.mxu3 %v1416_v46  ;;  %v1327_v9 = vld [vmem:[#allocation2 + $0x110] sm:$0xf]  ;;  %v1714_v10 = vld [vmem:[#allocation2 + $0x114] sm:$0xf0]  ;;  %v1272_v12 = vor.u32 %v1700_v3, %v1271_v2  ;;  %v1191_v16 = vld [vmem:[#allocation2] sm:$0xf]  ;;  %v1200_v19 = vor.u32 %v1682_v6, %v1199_v5 }
  0x17   :  { %709 = vmatpush.bf16.msra.mxu1 %v1288_v50  ;;  %v1391_v11 = vld [vmem:[#allocation2 + $0x190] sm:$0xf]  ;;  %v1730_v13 = vld [vmem:[#allocation2 + $0x194] sm:$0xf0]  ;;  %v1680_v17 = vld [vmem:[#allocation2 + $0x4] sm:$0xf0]  ;;  %v1328_v26 = vor.u32 %v1714_v10, %v1327_v9 }
  0x18   :  { %697 = vmatpush.bf16.msra.mxu0 %v1216_v56  ;;  %v1263_v14 = vld [vmem:[#allocation2 + $0x90] sm:$0xf]  ;;  %v1698_v15 = vld [vmem:[#allocation2 + $0x94] sm:$0xf0]  ;;  %v1319_v20 = vld [vmem:[#allocation2 + $0x100] sm:$0xf]  ;;  %v1392_v27 = vor.u32 %v1730_v13, %v1391_v11  ;;  %v1192_v35 = vor.u32 %v1680_v17, %v1191_v16 }
  0x19   :  { %723 = vmatpush.bf16.msra.mxu2 %v1344_v57  ;;  %v43_v18 = vld [vmem:[%s2016_s0] sm:$0xff]  ;;  %v1712_v21 = vld [vmem:[#allocation2 + $0x104] sm:$0xf0]  ;;  %v1383_v22 = vld [vmem:[#allocation2 + $0x180] sm:$0xf]  ;;  %v1264_v30 = vor.u32 %v1698_v15, %v1263_v14  ;;  %vm689_vm0 = vcmask 130048  }
  0x1a   :  { %736 = vmatpush.bf16.msra.mxu3 %v1408_v58  ;;  %v45_v23 = vld [vmem:[%s2016_s0 + $0xe] sm:$0xff]  ;;  %v47_v24 = vld [vmem:[%s2016_s0 + $0x1c] sm:$0xff]  ;;  %59 = vst [vmem:[#allocation1] ss:$4 sm:$0xff] %v43_v18  ;;  %v1503_v29 = vld [vmem:[#allocation2 + $0x270] sm:$0xf]  ;;  %v1320_v39 = vor.u32 %v1712_v21, %v1319_v20 }
  0x1b   :  { %710 = vmatpush.bf16.msra.mxu1 %v1280_v62  ;;  %v49_v25 = vld [vmem:[%s2016_s0 + $0x2a] sm:$0xff]  ;;  %61 = vst [vmem:[#allocation1 + $0x1] ss:$4 sm:$0xff] %v45_v23  ;;  %v1758_v31 = vld [vmem:[#allocation2 + $0x274] sm:$0xf0]  ;;  %vm1123_vm1 = vcmask 1040384  }
  0x1c   :  { %698 = vmatpush.bf16.msra.mxu0 %v1208_v4  ;;  %v1728_v28 = vld [vmem:[#allocation2 + $0x184] sm:$0xf0]  ;;  %v1693_v32 = vld [vmem:[#allocation2 + $0x74] sm:$0xf]  ;;  %63 = vst [vmem:[#allocation1 + $0x2] ss:$4 sm:$0xff] %v47_v24  ;;  %v1504_v43 = vor.u32 %v1758_v31, %v1503_v29 }
  0x1d   :  { %724 = vmatpush.bf16.msra.mxu2 %v1336_v7  ;;  %v1249_v33 = vld [vmem:[#allocation2 + $0x78] sm:$0xf0]  ;;  %v1255_v34 = vld [vmem:[#allocation2 + $0x80] sm:$0xf]  ;;  %65 = vst [vmem:[#allocation1 + $0x3] ss:$4 sm:$0xff] %v49_v25  ;;  %v1384_v40 = vor.u32 %v1728_v28, %v1383_v22 }
  0x1e   :  { %737 = vmatpush.bf16.msra.mxu3 %v1400_v8  ;;  %v1696_v36 = vld [vmem:[#allocation2 + $0x84] sm:$0xf0]  ;;  %v1575_v37 = vld [vmem:[#allocation2 + $0x300] sm:$0xf]  ;;  %v1567_v41 = vld [vmem:[#allocation2 + $0x2f0] sm:$0xf]  ;;  %v1252_v44 = vor.u32 %v1693_v32, %v1249_v33 }
  0x1f   :  { %711 = vmatpush.bf16.msra.mxu1 %v1272_v12  ;;  %v1776_v38 = vld [vmem:[#allocation2 + $0x304] sm:$0xf0]  ;;  %v1774_v42 = vld [vmem:[#allocation2 + $0x2f4] sm:$0xf0]  ;;  %v1709_v45 = vld [vmem:[#allocation2 + $0xf4] sm:$0xf]  ;;  %v1256_v47 = vor.u32 %v1696_v36, %v1255_v34 }
  0x20   :  { %699 = vmatpush.bf16.msra.mxu0 %v1200_v19  ;;  %v1313_v46 = vld [vmem:[#allocation2 + $0xf8] sm:$0xf0]  ;;  %v1576_v48 = vor.u32 %v1776_v38, %v1575_v37  ;;  %v1495_v49 = vld [vmem:[#allocation2 + $0x260] sm:$0xf]  ;;  %v1756_v50 = vld [vmem:[#allocation2 + $0x264] sm:$0xf0]  ;;  %v1568_v52 = vor.u32 %v1774_v42, %v1567_v41 }
  0x21   :  { %725 = vmatpush.bf16.msra.mxu2 %v1328_v26  ;;  %v1691_v51 = vld [vmem:[#allocation2 + $0x64] sm:$0xf]  ;;  %v1241_v53 = vld [vmem:[#allocation2 + $0x68] sm:$0xf0]  ;;  %v1559_v54 = vld [vmem:[#allocation2 + $0x2e0] sm:$0xf]  ;;  %v1316_v61 = vor.u32 %v1709_v45, %v1313_v46  ;;  %v1496_v62 = vor.u32 %v1756_v50, %v1495_v49 }
  0x22   :  { %738 = vmatpush.bf16.msra.mxu3 %v1392_v27  ;;  %v1772_v55 = vld [vmem:[#allocation2 + $0x2e4] sm:$0xf0]  ;;  %v1707_v56 = vld [vmem:[#allocation2 + $0xe4] sm:$0xf]  ;;  %v1305_v57 = vld [vmem:[#allocation2 + $0xe8] sm:$0xf0]  ;;  %v1244_v1 = vor.u32 %v1691_v51, %v1241_v53 }
  0x23   :  { %712 = vmatpush.bf16.msra.mxu1 %v1264_v30  ;;  %v1487_v58 = vld [vmem:[#allocation2 + $0x250] sm:$0xf]  ;;  %v1754_v59 = vld [vmem:[#allocation2 + $0x254] sm:$0xf0]  ;;  %v1560_v6 = vor.u32 %v1772_v55, %v1559_v54  ;;  %v1689_v8 = vld [vmem:[#allocation2 + $0x54] sm:$0xf]  ;;  %v1308_v12 = vor.u32 %v1707_v56, %v1305_v57 }
  0x24   :  { %700 = vmatpush.bf16.msra.mxu0 %v1192_v35  ;;  %v76_v60 = vld.sshfl [vmem:[#allocation1 + $0x10] sm:$0xff pattern:$0x73625140]  ;;  %v74_v63 = vld.sshfl [vmem:[#allocation1] sm:$0xff pattern:$0x73625140]  ;;  %v1488_v13 = vor.u32 %v1754_v59, %v1487_v58 }
  0x25   :  { %726 = vmatpush.bf16.msra.mxu2 %v1320_v39  ;;  %v1890_v0 = vpack.c.bf16 %v76_v60, %v76_v60  ;;  %v1892_v2 = vpack.c.bf16 %v74_v63, %v74_v63  ;;  %v77_v3 = vld.sshfl [vmem:[#allocation1 + $0x18] sm:$0xff pattern:$0x73625140]  ;;  %v75_v4 = vld.sshfl [vmem:[#allocation1 + $0x8] sm:$0xff pattern:$0x73625140] }
  0x26   :  { %739 = vmatpush.bf16.msra.mxu3 %v1384_v40  ;;  %v1894_v5 = vpack.c.bf16 %v77_v3, %v77_v3  ;;  %v1896_v7 = vpack.c.bf16 %v75_v4, %v75_v4  ;;  %v1233_v9 = vld [vmem:[#allocation2 + $0x58] sm:$0xf0]  ;;  %v1551_v10 = vld [vmem:[#allocation2 + $0x2d0] sm:$0xf]  ;;  %v1770_v11 = vld [vmem:[#allocation2 + $0x2d4] sm:$0xf0] }
  0x27   :  { %713 = vmatpush.bf16.msra.mxu1 %v1256_v47  ;;  %701 = vmatmul.bf16.vlgmr.msra.gmra.mxu0 %v1892_v2  ;;  %v1705_v14 = vld [vmem:[#allocation2 + $0xd4] sm:$0xf]  ;;  %v1236_v15 = vor.u32 %v1689_v8, %v1233_v9  ;;  %v1297_v16 = vld [vmem:[#allocation2 + $0xd8] sm:$0xf0]  ;;  %v1479_v17 = vld [vmem:[#allocation2 + $0x240] sm:$0xf]  ;;  %v1552_v19 = vor.u32 %v1770_v11, %v1551_v10 }
  0x28   :  { %745 = vmatpush.bf16.msrb.mxu0 %v1504_v43  ;;  %727 = vmatmul.bf16.vlgmr.msra.gmra.mxu2 %v1890_v0  ;;  %v1752_v18 = vld [vmem:[#allocation2 + $0x244] sm:$0xf0]  ;;  %v1687_v20 = vld [vmem:[#allocation2 + $0x44] sm:$0xf]  ;;  %v1225_v21 = vld [vmem:[#allocation2 + $0x48] sm:$0xf0]  ;;  %v1300_v26 = vor.u32 %v1705_v14, %v1297_v16 }
  0x29   :  { %778 = vmatpush.bf16.msrb.mxu2 %v1576_v48  ;;  %740 = vmatmul.bf16.vlgmr.msra.gmra.mxu3 %v1894_v5  ;;  %v1543_v22 = vld [vmem:[#allocation2 + $0x2c0] sm:$0xf]  ;;  %v1768_v23 = vld [vmem:[#allocation2 + $0x2c4] sm:$0xf0]  ;;  %v1703_v24 = vld [vmem:[#allocation2 + $0xc4] sm:$0xf]  ;;  %v1480_v27 = vor.u32 %v1752_v18, %v1479_v17  ;;  %v1228_v31 = vor.u32 %v1687_v20, %v1225_v21 }
  0x2a   :  { %784 = vmatpush.bf16.msrb.mxu3 %v1252_v44  ;;  %714 = vmatmul.bf16.vlgmr.msra.gmra.mxu1 %v1896_v7  ;;  %v1289_v25 = vld [vmem:[#allocation2 + $0xc8] sm:$0xf0]  ;;  %v1471_v28 = vld [vmem:[#allocation2 + $0x230] sm:$0xf]  ;;  %v1750_v29 = vld [vmem:[#allocation2 + $0x234] sm:$0xf0]  ;;  %v1544_v35 = vor.u32 %v1768_v23, %v1543_v22 }
  0x2b   :  { %758 = vmatpush.bf16.msrb.mxu1 %v1568_v52  ;;  %v44_v30 = vld [vmem:[%s2016_s0 + $0x8] sm:$0x3f]  ;;  %v1685_v32 = vld [vmem:[#allocation2 + $0x34] sm:$0xf]  ;;  %v46_v33 = vld [vmem:[%s2016_s0 + $0x16] sm:$0x3f]  ;;  %v1292_v40 = vor.u32 %v1703_v24, %v1289_v25  ;;  %v1472_v41 = vor.u32 %v1750_v29, %v1471_v28 }
  0x2c   :  { %746 = vmatpush.bf16.msrb.mxu0 %v1496_v62  ;;  %v48_v34 = vld [vmem:[%s2016_s0 + $0x24] sm:$0x3f]  ;;  %v50_v37 = vld [vmem:[%s2016_s0 + $0x32] sm:$0x3f]  ;;  %67 = vst [vmem:[#allocation1 + $0x20] ss:$4 sm:$0xff] %v44_v30 }
  0x2d   :  { %797 = vmatpush.bf16.msra.mxu2 %v1316_v61  ;;  %v1217_v36 = vld [vmem:[#allocation2 + $0x38] sm:$0xf0]  ;;  %v1535_v38 = vld [vmem:[#allocation2 + $0x2b0] sm:$0xf]  ;;  %v1766_v39 = vld [vmem:[#allocation2 + $0x2b4] sm:$0xf0] }
  0x2e   :  { %785 = vmatpush.bf16.msrb.mxu3 %v1244_v1  ;;  %69 = vst [vmem:[#allocation1 + $0x21] ss:$4 sm:$0xff] %v46_v33  ;;  %v1701_v42 = vld [vmem:[#allocation2 + $0xb4] sm:$0xf]  ;;  %v1281_v43 = vld [vmem:[#allocation2 + $0xb8] sm:$0xf0]  ;;  %v1220_v44 = vor.u32 %v1685_v32, %v1217_v36  ;;  %v1536_v47 = vor.u32 %v1766_v39, %v1535_v38 }
  0x2f   :  { %759 = vmatpush.bf16.msrb.mxu1 %v1560_v6  ;;  %71 = vst [vmem:[#allocation1 + $0x22] ss:$4 sm:$0xff] %v48_v34  ;;  %v1463_v45 = vld [vmem:[#allocation2 + $0x220] sm:$0xf]  ;;  %v1748_v46 = vld [vmem:[#allocation2 + $0x224] sm:$0xf0]  ;;  %v1284_v52 = vor.u32 %v1701_v42, %v1281_v43 }
  0x30   :  { %747 = vmatpush.bf16.msrb.mxu0 %v1488_v13  ;;  %73 = vst [vmem:[#allocation1 + $0x23] ss:$4 sm:$0xff] %v50_v37  ;;  %v1683_v48 = vld [vmem:[#allocation2 + $0x24] sm:$0xf]  ;;  %v1209_v49 = vld [vmem:[#allocation2 + $0x28] sm:$0xf0]  ;;  %v1464_v53 = vor.u32 %v1748_v46, %v1463_v45 }
  0x31   :  { %798 = vmatpush.bf16.msra.mxu2 %v1308_v12  ;;  %v1527_v50 = vld [vmem:[#allocation2 + $0x2a0] sm:$0xf]  ;;  %v1764_v51 = vld [vmem:[#allocation2 + $0x2a4] sm:$0xf0]  ;;  %v1699_v54 = vld [vmem:[#allocation2 + $0xa4] sm:$0xf]  ;;  %v1212_v56 = vor.u32 %v1683_v48, %v1209_v49 }
  0x32   :  { %786 = vmatpush.bf16.msrb.mxu3 %v1236_v15  ;;  %v1273_v55 = vld [vmem:[#allocation2 + $0xa8] sm:$0xf0]  ;;  %v1455_v57 = vld [vmem:[#allocation2 + $0x210] sm:$0xf]  ;;  %v1746_v58 = vld [vmem:[#allocation2 + $0x214] sm:$0xf0]  ;;  %v1528_v60 = vor.u32 %v1764_v51, %v1527_v50 }
  0x33   :  { %760 = vmatpush.bf16.msrb.mxu1 %v1552_v19  ;;  %v1681_v59 = vld [vmem:[#allocation2 + $0x14] sm:$0xf]  ;;  %v1201_v61 = vld [vmem:[#allocation2 + $0x18] sm:$0xf0]  ;;  %v1519_v62 = vld [vmem:[#allocation2 + $0x290] sm:$0xf]  ;;  %v1276_v9 = vor.u32 %v1699_v54, %v1273_v55  ;;  %v1456_v10 = vor.u32 %v1746_v58, %v1455_v57 }
  0x34   :  { %748 = vmatpush.bf16.msrb.mxu0 %v1480_v27  ;;  %v1762_v63 = vld [vmem:[#allocation2 + $0x294] sm:$0xf0]  ;;  %v1697_v1 = vld [vmem:[#allocation2 + $0x94] sm:$0xf]  ;;  %v1265_v3 = vld [vmem:[#allocation2 + $0x98] sm:$0xf0]  ;;  %v1204_v13 = vor.u32 %v1681_v59, %v1201_v61 }
  0x35   :  { %799 = vmatpush.bf16.msra.mxu2 %v1300_v26  ;;  %v1447_v4 = vld [vmem:[#allocation2 + $0x200] sm:$0xf]  ;;  %v1744_v6 = vld [vmem:[#allocation2 + $0x204] sm:$0xf0]  ;;  %v1679_v11 = vld [vmem:[#allocation2 + $0x4] sm:$0xf]  ;;  %v1520_v17 = vor.u32 %v1762_v63, %v1519_v62  ;;  %v1268_v24 = vor.u32 %v1697_v1, %v1265_v3 }
  0x36   :  { %787 = vmatpush.bf16.msrb.mxu3 %v1228_v31  ;;  %v1193_v14 = vld [vmem:[#allocation2 + $0x8] sm:$0xf0]  ;;  %v1725_v15 = vld [vmem:[#allocation2 + $0x174] sm:$0xf]  ;;  %v1377_v16 = vld [vmem:[#allocation2 + $0x178] sm:$0xf0]  ;;  %v1448_v25 = vor.u32 %v1744_v6, %v1447_v4 }
  0x37   :  { %761 = vmatpush.bf16.msrb.mxu1 %v1544_v35  ;;  %v80_v8 = vld.sshfl [vmem:[#allocation1 + $0x30] sm:$0xff pattern:$0x73625140]  ;;  %v1757_v18 = vld [vmem:[#allocation2 + $0x274] sm:$0xf]  ;;  %v1196_v28 = vor.u32 %v1679_v11, %v1193_v14  ;;  %v1380_v29 = vor.u32 %v1725_v15, %v1377_v16 }
  0x38   :  { %749 = vmatpush.bf16.msrb.mxu0 %v1472_v41  ;;  %v1914_v12 = vpack.c.bf16 %v80_v8, %v80_v8  ;;  %v1505_v19 = vld [vmem:[#allocation2 + $0x278] sm:$0xf0]  ;;  %v1511_v20 = vld [vmem:[#allocation2 + $0x280] sm:$0xf]  ;;  %v1760_v21 = vld [vmem:[#allocation2 + $0x284] sm:$0xf0] }
  0x39   :  { %800 = vmatpush.bf16.msra.mxu2 %v1292_v40  ;;  %v1695_v22 = vld [vmem:[#allocation2 + $0x84] sm:$0xf]  ;;  %v1741_v23 = vld [vmem:[#allocation2 + $0x1f4] sm:$0xf]  ;;  %v1441_v27 = vld [vmem:[#allocation2 + $0x1f8] sm:$0xf0]  ;;  %v1508_v33 = vor.u32 %v1757_v18, %v1505_v19  ;;  %v1512_v34 = vor.u32 %v1760_v21, %v1511_v20 }
  0x3a   :  { %788 = vmatpush.bf16.msrb.mxu3 %v1220_v44  ;;  %1581 = vmatmul.msk.bf16.vlgmr.msrb.gmra.mxu2 %vm689_vm0, %v1914_v12  ;;  %v78_v26 = vld.sshfl [vmem:[#allocation1 + $0x20] sm:$0xff pattern:$0x73625140]  ;;  %v1257_v30 = vld [vmem:[#allocation2 + $0x88] sm:$0xf0]  ;;  %v1444_v38 = vor.u32 %v1741_v23, %v1441_v27 }
  0x3b   :  { %762 = vmatpush.bf16.msrb.mxu1 %v1536_v47  ;;  %v1773_v31 = vld [vmem:[#allocation2 + $0x2f4] sm:$0xf]  ;;  %v1569_v32 = vld [vmem:[#allocation2 + $0x2f8] sm:$0xf0]  ;;  %v1723_v36 = vld [vmem:[#allocation2 + $0x164] sm:$0xf]  ;;  %v1918_v37 = vpack.c.bf16 %v78_v26, %v78_v26  ;;  %v1260_v42 = vor.u32 %v1695_v22, %v1257_v30 }
  0x3c   :  { %750 = vmatpush.bf16.msrb.mxu0 %v1464_v53  ;;  %v79_v35 = vld.sshfl [vmem:[#allocation1 + $0x28] sm:$0xff pattern:$0x73625140]  ;;  %v1369_v39 = vld [vmem:[#allocation2 + $0x168] sm:$0xf0]  ;;  %v1572_v45 = vor.u32 %v1773_v31, %v1569_v32 }
  0x3d   :  { %801 = vmatpush.bf16.msra.mxu2 %v1284_v52  ;;  %v1755_v40 = vld [vmem:[#allocation2 + $0x264] sm:$0xf]  ;;  %v1497_v41 = vld [vmem:[#allocation2 + $0x268] sm:$0xf0]  ;;  %v1920_v46 = vpack.c.bf16 %v79_v35, %v79_v35  ;;  %v1372_v47 = vor.u32 %v1723_v36, %v1369_v39  ;;  %v1721_v51 = vld [vmem:[#allocation2 + $0x154] sm:$0xf] }
  0x3e   :  { %789 = vmatpush.bf16.msrb.mxu3 %v1212_v56  ;;  %v1739_v43 = vld [vmem:[#allocation2 + $0x1e4] sm:$0xf]  ;;  %v1433_v44 = vld [vmem:[#allocation2 + $0x1e8] sm:$0xf0]  ;;  %v1500_v48 = vor.u32 %v1755_v40, %v1497_v41  ;;  %v1361_v53 = vld [vmem:[#allocation2 + $0x158] sm:$0xf0] }
  0x3f   :  { %763 = vmatpush.bf16.msrb.mxu1 %v1528_v60  ;;  %v1771_v49 = vld [vmem:[#allocation2 + $0x2e4] sm:$0xf]  ;;  %v1561_v50 = vld [vmem:[#allocation2 + $0x2e8] sm:$0xf0]  ;;  %v1436_v52 = vor.u32 %v1739_v43, %v1433_v44  ;;  %v1753_v54 = vld [vmem:[#allocation2 + $0x254] sm:$0xf]  ;;  %v1364_v59 = vor.u32 %v1721_v51, %v1361_v53 }
  0x40   :  { %751 = vmatpush.bf16.msrb.mxu0 %v1456_v10  ;;  %v1489_v55 = vld [vmem:[#allocation2 + $0x258] sm:$0xf0]  ;;  %v1737_v56 = vld [vmem:[#allocation2 + $0x1d4] sm:$0xf]  ;;  %v1564_v58 = vor.u32 %v1771_v49, %v1561_v50  ;;  %v1719_v63 = vld [vmem:[#allocation2 + $0x144] sm:$0xf] }
  0x41   :  { %802 = vmatpush.bf16.msra.mxu2 %v1276_v9  ;;  %v1425_v57 = vld [vmem:[#allocation2 + $0x1d8] sm:$0xf0]  ;;  %v1492_v60 = vor.u32 %v1753_v54, %v1489_v55  ;;  %v1769_v61 = vld [vmem:[#allocation2 + $0x2d4] sm:$0xf]  ;;  %v1353_v3 = vld [vmem:[#allocation2 + $0x148] sm:$0xf0] }
  0x42   :  { %790 = vmatpush.bf16.msrb.mxu3 %v1204_v13  ;;  %v1553_v62 = vld [vmem:[#allocation2 + $0x2d8] sm:$0xf0]  ;;  %v1428_v1 = vor.u32 %v1737_v56, %v1425_v57  ;;  %v1751_v4 = vld [vmem:[#allocation2 + $0x244] sm:$0xf]  ;;  %v1481_v6 = vld [vmem:[#allocation2 + $0x248] sm:$0xf0]  ;;  %v1356_v10 = vor.u32 %v1719_v63, %v1353_v3 }
  0x43   :  { %764 = vmatpush.bf16.msrb.mxu1 %v1520_v17  ;;  %v1735_v8 = vld [vmem:[#allocation2 + $0x1c4] sm:$0xf]  ;;  %v1417_v9 = vld [vmem:[#allocation2 + $0x1c8] sm:$0xf0]  ;;  %v1484_v11 = vor.u32 %v1751_v4, %v1481_v6  ;;  %v1717_v15 = vld [vmem:[#allocation2 + $0x134] sm:$0xf] }
  0x44   :  { %752 = vmatpush.bf16.msrb.mxu0 %v1448_v25  ;;  %v1767_v13 = vld [vmem:[#allocation2 + $0x2c4] sm:$0xf]  ;;  %v1545_v14 = vld [vmem:[#allocation2 + $0x2c8] sm:$0xf0]  ;;  %v1420_v16 = vor.u32 %v1735_v8, %v1417_v9  ;;  %v1345_v17 = vld [vmem:[#allocation2 + $0x138] sm:$0xf0] }
  0x45   :  { %803 = vmatpush.bf16.msra.mxu2 %v1268_v24  ;;  %v1749_v18 = vld [vmem:[#allocation2 + $0x234] sm:$0xf]  ;;  %v1473_v19 = vld [vmem:[#allocation2 + $0x238] sm:$0xf0]  ;;  %v1548_v22 = vor.u32 %v1767_v13, %v1545_v14  ;;  %v1348_v23 = vor.u32 %v1717_v15, %v1345_v17  ;;  %v1715_v27 = vld [vmem:[#allocation2 + $0x124] sm:$0xf] }
  0x46   :  { %791 = vmatpush.bf16.msrb.mxu3 %v1196_v28  ;;  %v1733_v20 = vld [vmem:[#allocation2 + $0x1b4] sm:$0xf]  ;;  %v1409_v21 = vld [vmem:[#allocation2 + $0x1b8] sm:$0xf0]  ;;  %v1476_v24 = vor.u32 %v1749_v18, %v1473_v19  ;;  %v1465_v30 = vld [vmem:[#allocation2 + $0x228] sm:$0xf0] }
  0x47   :  { %765 = vmatpush.bf16.msrb.mxu1 %v1512_v34  ;;  %753 = vmatmul.bf16.vlgmr.msrb.gmra.mxu0 %v1918_v37  ;;  %v1765_v25 = vld [vmem:[#allocation2 + $0x2b4] sm:$0xf]  ;;  %v1537_v26 = vld [vmem:[#allocation2 + $0x2b8] sm:$0xf0]  ;;  %v1412_v28 = vor.u32 %v1733_v20, %v1409_v21  ;;  %v1731_v31 = vld [vmem:[#allocation2 + $0x1a4] sm:$0xf] }
  0x48   :  { %810 = vmatpush.bf16.msra.mxu0 %v1380_v29  ;;  %v1337_v29 = vld [vmem:[#allocation2 + $0x128] sm:$0xf0]  ;;  %v1763_v36 = vld [vmem:[#allocation2 + $0x2a4] sm:$0xf]  ;;  %v1713_v39 = vld [vmem:[#allocation2 + $0x114] sm:$0xf] }
  0x49   :  { %804 = vmatpush.bf16.msra.mxu2 %v1260_v42  ;;  %792 = vmatmul.bf16.vlgmr.msrb.gmra.mxu3 %v1892_v2  ;;  %v1556_v2 = vor.u32 %v1769_v61, %v1553_v62  ;;  %v1401_v32 = vld [vmem:[#allocation2 + $0x1a8] sm:$0xf0]  ;;  %v1340_v34 = vor.u32 %v1715_v27, %v1337_v29  ;;  %v1329_v41 = vld [vmem:[#allocation2 + $0x118] sm:$0xf0]  ;;  %v1745_v42 = vld [vmem:[#allocation2 + $0x214] sm:$0xf] }
  0x4a   :  { %836 = vmatpush.bf16.msra.mxu3 %v1508_v33  ;;  %766 = vmatmul.bf16.vlgmr.msrb.gmra.mxu1 %v1920_v46  ;;  %v1540_v33 = vor.u32 %v1765_v25, %v1537_v26  ;;  %v1404_v40 = vor.u32 %v1731_v31, %v1401_v32  ;;  %v1457_v43 = vld [vmem:[#allocation2 + $0x218] sm:$0xf0]  ;;  %v1729_v44 = vld [vmem:[#allocation2 + $0x194] sm:$0xf]  ;;  %v1321_v54 = vld [vmem:[#allocation2 + $0x108] sm:$0xf0] }
  0x4b   :  { %823 = vmatpush.bf16.msra.mxu1 %v1444_v38  ;;  %v1529_v38 = vld [vmem:[#allocation2 + $0x2a8] sm:$0xf0]  ;;  %v1460_v49 = vor.u32 %v1745_v42, %v1457_v43  ;;  %v1761_v50 = vld [vmem:[#allocation2 + $0x294] sm:$0xf]  ;;  %v1521_v51 = vld [vmem:[#allocation2 + $0x298] sm:$0xf0] }
  0x4c   :  { %811 = vmatpush.bf16.msra.mxu0 %v1372_v47  ;;  %805 = vmatmul.bf16.vlgmr.msra.gmra.mxu2 %v1896_v7  ;;  %v1747_v7 = vld [vmem:[#allocation2 + $0x224] sm:$0xf]  ;;  %v1532_v47 = vor.u32 %v1763_v36, %v1529_v38  ;;  %v1449_v56 = vld [vmem:[#allocation2 + $0x208] sm:$0xf0]  ;;  %v1784_v9 = vld [vmem:[%s2019_s3 + $0x38] sm:$0xff] }
  0x4d   :  { %849 = vmatpush.bf16.msrb.mxu2 %v1572_v45  ;;  %v1468_v35 = vor.u32 %v1747_v7, %v1465_v30  ;;  %v1393_v45 = vld [vmem:[#allocation2 + $0x198] sm:$0xf0]  ;;  %v1743_v55 = vld [vmem:[#allocation2 + $0x204] sm:$0xf]  ;;  %v1577_v4 = vld [vmem:[#allocation2 + $0x308] sm:$0xf0] }
  0x4e   :  { %837 = vmatpush.bf16.msra.mxu3 %v1500_v48  ;;  %v1332_v48 = vor.u32 %v1713_v39, %v1329_v41  ;;  %v1396_v53 = vor.u32 %v1729_v44, %v1393_v45  ;;  %v1727_v57 = vld [vmem:[#allocation2 + $0x184] sm:$0xf]  ;;  %v1452_v61 = vor.u32 %v1743_v55, %v1449_v56  ;;  %v1777_v13 = vld [vmem:[%s2019_s3] sm:$0xff]  ;;  %v1792_v26 = vld [vmem:[%s2019_s3 + $0x78] sm:$0xff] }
  0x4f   :  { %824 = vmatpush.bf16.msra.mxu1 %v1436_v52  ;;  %v1711_v52 = vld [vmem:[#allocation2 + $0x104] sm:$0xf]  ;;  %v193_v15 = vld [vmem:[%s2018_s2] sm:$0x3]  ;;  %v1791_v7 = vld [vmem:[%s2019_s3 + $0x70] sm:$0xff] }
  0x50   :  { %812 = vmatpush.bf16.msra.mxu0 %v1364_v59  ;;  %v1524_v59 = vor.u32 %v1761_v50, %v1521_v51  ;;  %v1759_v63 = vld [vmem:[#allocation2 + $0x284] sm:$0xf]  ;;  %v195_v19 = vperm.slane %v193_v15, 0  ;;  %v1788_v43 = vld [vmem:[%s2019_s3 + $0x58] sm:$0xff]  ;;  %v1787_v45 = vld [vmem:[%s2019_s3 + $0x50] sm:$0xff] }
  0x51   :  { %850 = vmatpush.bf16.msrb.mxu2 %v1564_v58  ;;  %v1385_v58 = vld [vmem:[#allocation2 + $0x188] sm:$0xf0]  ;;  %v1775_v3 = vld [vmem:[#allocation2 + $0x304] sm:$0xf] }
  0x52   :  { %838 = vmatpush.bf16.msra.mxu3 %v1492_v60  ;;  %v1324_v60 = vor.u32 %v1711_v52, %v1321_v54  ;;  %v1388_v62 = vor.u32 %v1727_v57, %v1385_v58  ;;  %v1580_v8 = vor.u32 %v1775_v3, %v1577_v4  ;;  %v196_v52 = vperm.slane %v193_v15, 1  ;;  %v1804_v15 = vld [vmem:[%s2020_s4] ss:$0 sm:$0xff] }
  0x53   :  { %825 = vmatpush.bf16.msra.mxu1 %v1428_v1  ;;  %v1513_v1 = vld [vmem:[#allocation2 + $0x288] sm:$0xf0] }
  0x54   :  { %813 = vmatpush.bf16.msra.mxu0 %v1356_v10  ;;  %v1516_v6 = vor.u32 %v1759_v63, %v1513_v1  ;;  %v1778_v10 = vld [vmem:[%s2019_s3 + $0x8] sm:$0xff] }
  0x55   :  { %851 = vmatpush.bf16.msrb.mxu2 %v1556_v2 }
  0x56   :  { %839 = vmatpush.bf16.msra.mxu3 %v1484_v11 }
  0x57   :  { %826 = vmatpush.bf16.msra.mxu1 %v1420_v16 }
  0x58   :  { %814 = vmatpush.bf16.msra.mxu0 %v1348_v23 }
  0x59   :  { %852 = vmatpush.bf16.msrb.mxu2 %v1548_v22 }
  0x5a   :  { %840 = vmatpush.bf16.msra.mxu3 %v1476_v24 }
  0x5b   :  { %827 = vmatpush.bf16.msra.mxu1 %v1412_v28 }
  0x5c   :  { %815 = vmatpush.bf16.msra.mxu0 %v1340_v34  ;;  %v1790_v34 = vld [vmem:[%s2019_s3 + $0x68] sm:$0xff] }
  0x5d   :  { %853 = vmatpush.bf16.msrb.mxu2 %v1540_v33 }
  0x5e   :  { %841 = vmatpush.bf16.msra.mxu3 %v1468_v35 }
  0x5f   :  { %828 = vmatpush.bf16.msra.mxu1 %v1404_v40  ;;  %v1789_v40 = vld [vmem:[%s2019_s3 + $0x60] sm:$0xff] }
  0x60   :  { %816 = vmatpush.bf16.msra.mxu0 %v1332_v48  ;;  %v1786_v48 = vld [vmem:[%s2019_s3 + $0x48] sm:$0xff] }
  0x61   :  { %854 = vmatpush.bf16.msrb.mxu2 %v1532_v47 }
  0x62   :  { %842 = vmatpush.bf16.msra.mxu3 %v1460_v49  ;;  %v1785_v49 = vld [vmem:[%s2019_s3 + $0x40] sm:$0xff] }
  0x63   :  { %829 = vmatpush.bf16.msra.mxu1 %v1396_v53 }
  0x64   :  { %817 = vmatpush.bf16.msra.mxu0 %v1324_v60 }
  0x65   :  { %855 = vmatpush.bf16.msrb.mxu2 %v1524_v59 }
  0x66   :  { %843 = vmatpush.bf16.msra.mxu3 %v1452_v61 }
  0x67   :  { %830 = vmatpush.bf16.msra.mxu1 %v1388_v62  ;;  %818 = vmatmul.bf16.vlgmr.msra.gmra.mxu0 %v1890_v0  ;;  %v1783_v0 = vld [vmem:[%s2019_s3 + $0x30] sm:$0xff] }
  0x69   :  { %844 = vmatmul.bf16.vlgmr.msra.gmra.mxu3 %v1918_v37  ;;  %856 = vmatpush.bf16.msrb.mxu2 %v1516_v6  ;;  %v1781_v37 = vld [vmem:[%s2019_s3 + $0x20] sm:$0xff] }
  0x6a   :  { %831 = vmatmul.bf16.vlgmr.msra.gmra.mxu1 %v1894_v5  ;;  %v1782_v5 = vld [vmem:[%s2019_s3 + $0x28] sm:$0xff]  ;;  %1024 = vmatpush.bf16.msrb.mxu3 %v1792_v26 }
  0x6b   :  { %1011 = vmatpush.bf16.msrb.mxu1 %v1784_v9 }
  0x6c   :  { %857 = vmatmul.bf16.vlgmr.msrb.gmra.mxu2 %v1920_v46  ;;  %v1779_v46 = vld [vmem:[%s2019_s3 + $0x10] sm:$0xff] }
  0x6d   :  { %869 = vmatpush.bf16.msra.mxu2 %v1580_v8 }
  0x6e   :  { %1025 = vmatpush.bf16.msrb.mxu3 %v1791_v7 }
  0x6f   :  { %1012 = vmatpush.bf16.msrb.mxu1 %v1783_v0  ;;  %v1800_v0 = vld [vmem:[%s2021_s5 + $0x38] sm:$0xff] }
  0x70   :  { %1107 = vmatpush.bf16.msrb.mxu0 %v1800_v0 }
  0x72   :  { %1026 = vmatpush.bf16.msrb.mxu3 %v1790_v34 }
  0x73   :  { %1013 = vmatpush.bf16.msrb.mxu1 %v1782_v5  ;;  %v1799_v5 = vld [vmem:[%s2021_s5 + $0x30] sm:$0xff] }
  0x74   :  { %1108 = vmatpush.bf16.msrb.mxu0 %v1799_v5 }
  0x76   :  { %1027 = vmatpush.bf16.msrb.mxu3 %v1789_v40 }
  0x77   :  { %1014 = vmatpush.bf16.msrb.mxu1 %v1781_v37  ;;  %v1798_v37 = vld [vmem:[%s2021_s5 + $0x28] sm:$0xff] }
  0x78   :  { %1109 = vmatpush.bf16.msrb.mxu0 %v1798_v37 }
  0x7a   :  { %1028 = vmatpush.bf16.msrb.mxu3 %v1788_v43 }
  0x7c   :  { %1582 = vmatmul.msk.bf16.vlgmr.msra.gmra.mxu2 %vm689_vm0, %v1914_v12  ;;  %v1780_v12 = vld [vmem:[%s2019_s3 + $0x18] sm:$0xff] }
  0x7d   :  { %1015 = vmatpush.bf16.msrb.mxu1 %v1780_v12  ;;  %v1797_v12 = vld [vmem:[%s2021_s5 + $0x20] sm:$0xff] }
  0x7e   :  { %1029 = vmatpush.bf16.msrb.mxu3 %v1787_v45  ;;  %1110 = vmatpush.bf16.msrb.mxu0 %v1797_v12 }
  0x81   :  { %1016 = vmatpush.bf16.msrb.mxu1 %v1779_v46  ;;  %v1796_v46 = vld [vmem:[%s2021_s5 + $0x18] sm:$0xff] }
  0x82   :  { %1030 = vmatpush.bf16.msrb.mxu3 %v1786_v48  ;;  %1111 = vmatpush.bf16.msrb.mxu0 %v1796_v46 }
  0x85   :  { %1017 = vmatpush.bf16.msrb.mxu1 %v1778_v10 }
  0x86   :  { %1031 = vmatpush.bf16.msrb.mxu3 %v1785_v49 }
  0x89   :  { %1018 = vmatpush.bf16.msrb.mxu1 %v1777_v13  ;;  %v1794_v13 = vld [vmem:[%s2021_s5 + $0x8] sm:$0xff] }
  0xa4   :  { %v702_v2 = vpop.f32.mrf.mxu0 }
  0xa5   :  { %v703_v21 = vadd.f32 %v702_v2, %v195_v19  ;;  %v1795_v2 = vld [vmem:[%s2021_s5 + $0x10] sm:$0xff] }
  0xa6   :  { %1112 = vmatpush.bf16.msrb.mxu0 %v1795_v2 }
  0xa7   :  { %v715_v11 = vpop.f32.mrf.mxu1 }
  0xa8   :  { %v716_v23 = vadd.f32 %v715_v11, %v703_v21 }
  0xaa   :  { %1113 = vmatpush.bf16.msrb.mxu0 %v1794_v13 }
  0xab   :  { %v728_v14 = vpop.f32.mrf.mxu2 }
  0xac   :  { %v704_v16 = vpop.f32.mrf.mxu0  ;;  %v741_v17 = vpop.f32.mrf.mxu3  ;;  %v729_v24 = vadd.f32 %v728_v14, %v716_v23  ;;  %v1793_v14 = vld [vmem:[%s2021_s5] sm:$0xff] }
  0xae   :  { %v742_v27 = vadd.f32 %v741_v17, %v729_v24  ;;  %1114 = vmatpush.bf16.msrb.mxu0 %v1793_v14 }
  0xaf   :  { %v717_v18 = vpop.f32.mrf.mxu1 }
  0xb3   :  { %v730_v20 = vpop.f32.mrf.mxu2 }
  0xb4   :  { %v743_v22 = vpop.f32.mrf.mxu3 }
  0xb5   :  { %v1805_v22 = vld [vmem:[%s2022_s6] ss:$0 sm:$0xff] }
  0xbd   :  { %v780_v25 = vpop.f32.mrf.mxu2 }
  0xc4   :  { %v754_v28 = vpop.f32.mrf.mxu0 }
  0xc5   :  { %v755_v29 = vadd.f32 %v754_v28, %v742_v27  ;;  %v782_v33 = vpop.f32.mrf.mxu2 }
  0xc7   :  { %v767_v30 = vpop.f32.mrf.mxu1 }
  0xc8   :  { %v768_v31 = vadd.f32 %v767_v30, %v755_v29 }
  0xca   :  { %v781_v32 = vadd.f32 %v780_v25, %v768_v31 }
  0xcc   :  { %v875_v35 = vmax.f32 %v781_v32, 0.0  ;;  %v793_v36 = vpop.f32.mrf.mxu3  ;;  %v756_v38 = vpop.f32.mrf.mxu0 }
  0xcd   :  { %v794_v55 = vadd.f32 %v793_v36, %v196_v52 }
  0xce   :  { %v877_v39 = vpack.c.bf16 %v875_v35, %v875_v35 }
  0xcf   :  { %v769_v41 = vpop.f32.mrf.mxu1  ;;  %v806_v42 = vpop.f32.mrf.mxu2 }
  0xd0   :  { %1019 = vmatmul.bf16.vlgmr.msrb.gmra.mxu1 %v877_v39  ;;  %v807_v58 = vadd.f32 %v806_v42, %v794_v55 }
  0xd4   :  { %v795_v44 = vpop.f32.mrf.mxu3 }
  0xd7   :  { %v808_v47 = vpop.f32.mrf.mxu2 }
  0xe4   :  { %v819_v50 = vpop.f32.mrf.mxu0 }
  0xe5   :  { %v820_v60 = vadd.f32 %v819_v50, %v807_v58 }
  0xe7   :  { %v832_v51 = vpop.f32.mrf.mxu1 }
  0xe8   :  { %v833_v62 = vadd.f32 %v832_v51, %v820_v60 }
  0xec   :  { %v845_v53 = vpop.f32.mrf.mxu3  ;;  %v821_v54 = vpop.f32.mrf.mxu0 }
  0xed   :  { %v846_v63 = vadd.f32 %v845_v53, %v833_v62 }
  0xef   :  { %v834_v56 = vpop.f32.mrf.mxu1  ;;  %v858_v57 = vpop.f32.mrf.mxu2 }
  0xf0   :  { %v859_v1 = vadd.f32 %v858_v57, %v846_v63 }
  0xf4   :  { %v847_v59 = vpop.f32.mrf.mxu3 }
  0xf7   :  { %v860_v61 = vpop.f32.mrf.mxu2 }
  0xff   :  { %v871_v3 = vpop.f32.mrf.mxu2 }
 0x100   :  { %v872_v4 = vadd.f32 %v871_v3, %v859_v1 }
 0x102   :  { %v876_v6 = vmax.f32 %v872_v4, 0.0 }
 0x104   :  { %v878_v8 = vpack.c.bf16 %v876_v6, %v876_v6 }
 0x106   :  { %1032 = vmatmul.bf16.vlgmr.msrb.gmra.mxu3 %v878_v8 }
 0x107   :  { %v873_v9 = vpop.f32.mrf.mxu2 }
 0x14d   :  { %v1020_v10 = vpop.f32.mrf.mxu1 }
 0x14e   :  { %v1021_v16 = vadd.f32 %v1804_v15, %v1020_v10 }
 0x155   :  { %v1022_v11 = vpop.f32.mrf.mxu1 }
 0x189   :  { %v1033_v17 = vpop.f32.mrf.mxu3 }
 0x18a   :  { %v1034_v18 = vadd.f32 %v1033_v17, %v1021_v16 }
 0x18c   :  { %v1037_v19 = vmax.f32 %v1034_v18, 0.0 }
 0x18e   :  { %v1038_v20 = vpack.c.bf16 %v1037_v19, %v1037_v19 }
 0x190   :  { %1115 = vmatmul.bf16.vlgmr.msrb.gmra.mxu0 %v1038_v20 }
 0x191   :  { %v1035_v21 = vpop.f32.mrf.mxu3 }
 0x20d   :  { %v1116_v23 = vpop.f32.mrf.mxu0 }
 0x20e   :  { %v1117_v24 = vadd.f32 %v1805_v22, %v1116_v23 }
 0x210   :  { %v1120_v25 = vpack.c.bf16 %v1117_v24, %v1117_v24 }
 0x212   :  { %v1122_v26 = vrot.slane %v1120_v25, 3 }
 0x214   :  { %v1126_v27 = vsel %vm1123_vm1, %v1120_v25, %v1122_v26 }
 0x215   :  { %1143 = vst [vmem:[#allocation4] sm:$0x1] %v1126_v27  ;;  %v1118_v28 = vpop.f32.mrf.mxu0 }
 0x21c   :  { %v1165_v29 = vld [vmem:[#allocation4] sm:$0x1] }
 0x21d   :  { %1166 = vst [vmem:[%s2023_s7] sm:$0x1] %v1165_v29 }
 0x21e   :  { %1184 = vsyncpa [#allocation3], 1 }

</bundles_post_ra>
